<compile_context>
chip_gen: v5e
topology: v5e:2x2
jax: 0.10.0
libtpu: 0.0.40
codegen_flags: <defaults>
</compile_context>

<pallas_src>
import jax
import jax.numpy as jnp
from jax.experimental import pallas as pl
from jax.experimental.pallas import tpu as pltpu


def _gated_attn_kernel(x_ref, wab_ref, bab_ref, wct_ref, bct_ref, At_ref):
    """One TILE_N-row tile of the gated attention scores (stored transposed)."""
    D = wct_ref.shape[1]
    x = x_ref[...]                                                 # (TILE_N, L)
    # Fused attention_a / attention_b branches: one MXU pass over x.
    y = jnp.dot(x, wab_ref[...],
                preferred_element_type=jnp.float32)                # (TILE_N, 2D) f32
    y = y + bab_ref[...]                                           # bias add in f32
    a = jnp.tanh(y[:, :D])                                         # attention_a
    # attention_b: sigmoid(z) == 0.5*(tanh(z/2)+1)  -> single EUP transcendental
    b = 0.5 * (jnp.tanh(0.5 * y[:, D:]) + 1.0)
    gated = (a * b).astype(wct_ref.dtype)                          # (TILE_N, D)
    # attention_c, emitted lane-dense as A^T = Wc^T @ gated^T.
    At = jax.lax.dot_general(
        wct_ref[...], gated,
        dimension_numbers=(((1,), (1,)), ((), ())),                # contract D with D
        preferred_element_type=jnp.float32)                        # (C, TILE_N)
    At_ref[...] = (At + bct_ref[...]).astype(At_ref.dtype)


def _round_up(v, m):
    return (v + m - 1) // m * m


def attn_net_gated(x, wa, ba, wb, bb, wc, bc, *, tile_n=None, compute_dtype=None):
    """Returns (A, x) exactly like the torch module's forward.

    Weights are stored transposed w.r.t. torch: wa/wb are (L, D), wc is (D, C).
    Biases may be (D,)/(1, D) and (C,)/(1, C).
    """
    N, L = x.shape
    D = wa.shape[1]
    C = wc.shape[1]

    cdt = jnp.dtype(compute_dtype) if compute_dtype is not None else x.dtype
    itemsize = jnp.dtype(cdt).itemsize

    # Fuse the two gating branches into a single (L, 2D) weight / (1, 2D) bias.
    wab = jnp.concatenate([wa, wb], axis=1).astype(cdt)            # (L, 2D)
    bab = jnp.concatenate([ba.reshape(1, D), bb.reshape(1, D)],
                          axis=1).astype(jnp.float32)              # (1, 2D)
    wct = wc.T.astype(cdt)                                         # (C, D)
    bct = bc.reshape(C, 1).astype(jnp.float32)                     # (C, 1)
    x_c = x.astype(cdt)                                            # no-op for f32 path

    # Row-tile size: big enough to amortize per-step overhead (~600 cyc),
    # small enough that the double-buffered x tile fits scoped VMEM on all of
    # v5e / v6e / v7x (v7x has only 64 MiB physical VMEM per TC).
    if tile_n is None:
        target_x_tile_bytes = 4 * 1024 * 1024
        tile_n = max(128, (target_x_tile_bytes // max(1, L * itemsize)) // 128 * 128)
        tile_n = min(tile_n, 2048)
    tile_n = max(128, _round_up(int(tile_n), 128))
    tile_n = min(tile_n, _round_up(N, 128))

    # x itself is NOT padded: the trailing partial row tile is handled by
    # Pallas' clamped boundary DMA (no extra HBM traffic, no wrapper copy).
    # The output is padded to whole tiles so its blocks tile exactly.
    num_tiles = pl.cdiv(N, tile_n)
    n_pad = num_tiles * tile_n

    # Rough VMEM budget: double-buffered x/A tiles + resident weights (+slack).
    est = (2 * (tile_n * L * itemsize + C * tile_n * 4)
           + 2 * (L * 2 * D + C * D) * itemsize
           + 2 * (2 * D + C) * 4)
    vmem_limit = int(min(max(2 * est, 32 * 1024 * 1024), 64 * 1024 * 1024))

    cost = pl.CostEstimate(
        flops=2 * N * L * (2 * D) + 2 * N * D * C + 4 * N * D,
        transcendentals=2 * N * D,
        bytes_accessed=(N * L * itemsize                           # x (clamped DMA)
                        + (L * 2 * D + C * D) * itemsize           # weights
                        + (2 * D + C) * 4                          # biases
                        + C * n_pad * 4))                          # A^T

    At = pl.pallas_call(
        _gated_attn_kernel,
        out_shape=jax.ShapeDtypeStruct((C, n_pad), jnp.float32),
        grid=(num_tiles,),
        in_specs=[
            pl.BlockSpec((tile_n, L), lambda i: (i, 0)),     # x row tile (streamed)
            pl.BlockSpec((L, 2 * D), lambda i: (0, 0)),      # fused Wa|Wb (resident)
            pl.BlockSpec((1, 2 * D), lambda i: (0, 0)),      # fused ba|bb (resident)
            pl.BlockSpec((C, D), lambda i: (0, 0)),          # Wc^T       (resident)
            pl.BlockSpec((C, 1), lambda i: (0, 0)),          # bc         (resident)
        ],
        out_specs=pl.BlockSpec((C, tile_n), lambda i: (0, i)),  # lane-dense A^T
        compiler_params=pltpu.CompilerParams(
            dimension_semantics=("parallel",),               # shard tiles on v7x's 2 TCs
            vmem_limit_bytes=vmem_limit),
        cost_estimate=cost,
    )(x_c, wab, bab, wct, bct)

    A = At[:, :N].T.astype(jnp.float32)                            # (N, C)
    return A, x


def init_params(key, L, D, n_classes):
    """Deterministic, torch-Linear-like (uniform +-1/sqrt(fan_in)) init."""
    ks = jax.random.split(key, 6)
    u = lambda k, shape, fan_in: jax.random.uniform(
        k, shape, jnp.float32, -1.0 / jnp.sqrt(fan_in), 1.0 / jnp.sqrt(fan_in))
    wa = u(ks[0], (L, D), L)
    ba = u(ks[1], (1, D), L)
    wb = u(ks[2], (L, D), L)
    bb = u(ks[3], (1, D), L)
    wc = u(ks[4], (D, n_classes), D)
    bc = u(ks[5], (1, n_classes), D)
    return wa, ba, wb, bb, wc, bc


if __name__ == "__main__":
    # Small shapes consistent with the module: L=32 input dim, D=16 hidden,
    # n_classes=1, N=8 instances (rows handled inside one partial 128-row tile).
    # TODO(synk): dropout=True branch (nn.Dropout p=0.25) not implemented; the
    # default / eval path of the torch module has no dropout.
    N, L, D, C = 8, 32, 16, 1
    key = jax.random.PRNGKey(0)
    kx, kp = jax.random.split(key)
    x = jax.random.normal(kx, (N, L), dtype=jnp.float32)
    wa, ba, wb, bb, wc, bc = init_params(kp, L, D, C)

    # f32 path.
    A, x_out = attn_net_gated(x, wa, ba, wb, bb, wc, bc)
    jax.block_until_ready((A, x_out))

    # Plain-JAX reference of the same math.
    a_ref = jnp.tanh(x @ wa + ba)
    b_ref = jax.nn.sigmoid(x @ wb + bb)
    A_ref = (a_ref * b_ref) @ wc + bc
    assert A.shape == (N, C) and x_out.shape == (N, L)
    assert jnp.allclose(A, A_ref, atol=1e-4, rtol=1e-4)
    assert jnp.array_equal(x_out, x)

    # bf16 matmul path (f32 accumulation / elementwise), looser tolerance.
    A16, _ = attn_net_gated(x, wa, ba, wb, bb, wc, bc,
                            compute_dtype=jnp.bfloat16)
    jax.block_until_ready(A16)
    assert jnp.allclose(A16, A_ref, atol=5e-2, rtol=5e-2)

    # Exercise a multi-tile, non-multiple-of-tile N to cover the partial
    # boundary block path (no wrapper-side padding of x).
    N2 = 300
    x2 = jax.random.normal(jax.random.PRNGKey(1), (N2, L), dtype=jnp.float32)
    A2, _ = attn_net_gated(x2, wa, ba, wb, bb, wc, bc, tile_n=128)
    jax.block_until_ready(A2)
    A2_ref = (jnp.tanh(x2 @ wa + ba) * jax.nn.sigmoid(x2 @ wb + bb)) @ wc + bc
    assert A2.shape == (N2, C)
    assert jnp.allclose(A2, A2_ref, atol=1e-4, rtol=1e-4)

    print("KERNEL_OK")
</pallas_src>

<mosaic_0001>
module attributes {stable_mosaic.version = 11 : i64} {
  func.func @_gated_attn_kernel(%arg0: i32, %arg1: memref<128x32xf32, #tpu.memory_space<vmem>>, %arg2: memref<32x32xf32, #tpu.memory_space<vmem>>, %arg3: memref<1x32xf32, #tpu.memory_space<vmem>>, %arg4: memref<1x16xf32, #tpu.memory_space<vmem>>, %arg5: memref<1x1xf32, #tpu.memory_space<vmem>>, %arg6: memref<1x128xf32, #tpu.memory_space<vmem>>) attributes {dimension_semantics = [#tpu.dimension_semantics<parallel>], iteration_bounds = array<i64: 1>, scalar_prefetch = 0 : i64, scratch_operands = 0 : i64, tpu.core_type = #tpu.core_type<tc>, window_params = [{transform_indices = @transform_0, window_bounds = array<i64: 128, 32>}, {pipeline_mode = #tpu.pipeline_mode<synchronous>, transform_indices = @transform_1, window_bounds = array<i64: 32, 32>}, {pipeline_mode = #tpu.pipeline_mode<synchronous>, transform_indices = @transform_2, window_bounds = array<i64: 1, 32>}, {pipeline_mode = #tpu.pipeline_mode<synchronous>, transform_indices = @transform_3, window_bounds = array<i64: 1, 16>}, {pipeline_mode = #tpu.pipeline_mode<synchronous>, transform_indices = @transform_4, window_bounds = array<i64: 1, 1>}, {transform_indices = @transform_5, window_bounds = array<i64: 1, 128>}]} {
    %c0 = arith.constant 0 : index
    %c0_0 = arith.constant 0 : index
    %0 = vector.load %arg1[%c0, %c0_0] : memref<128x32xf32, #tpu.memory_space<vmem>>, vector<128x32xf32>
    %c0_1 = arith.constant 0 : index
    %c0_2 = arith.constant 0 : index
    %1 = vector.load %arg2[%c0_1, %c0_2] : memref<32x32xf32, #tpu.memory_space<vmem>>, vector<32x32xf32>
    %cst = arith.constant dense<0.000000e+00> : vector<128x32xf32>
    %2 = tpu.matmul %0, %1, %cst {dimension_numbers = #tpu.dot_dimension_numbers<[1], [0], [0], [1], [0, 0, 1, 1], [], []>} : vector<128x32xf32>, vector<32x32xf32>, vector<128x32xf32> -> vector<128x32xf32>
    %c0_3 = arith.constant 0 : index
    %c0_4 = arith.constant 0 : index
    %3 = vector.load %arg3[%c0_3, %c0_4] : memref<1x32xf32, #tpu.memory_space<vmem>>, vector<1x32xf32>
    %4 = vector.broadcast %3 : vector<1x32xf32> to vector<128x32xf32>
    %5 = arith.addf %2, %4 : vector<128x32xf32>
    %6 = vector.extract_strided_slice %5 {offsets = [0, 0], sizes = [128, 16], strides = [1, 1]} : vector<128x32xf32> to vector<128x16xf32>
    %7 = math.tanh %6 : vector<128x16xf32>
    %8 = vector.extract_strided_slice %5 {offsets = [0, 16], sizes = [128, 16], strides = [1, 1]} : vector<128x32xf32> to vector<128x16xf32>
    %cst_5 = arith.constant 5.000000e-01 : f32
    %9 = vector.broadcast %cst_5 : f32 to vector<128x16xf32>
    %10 = arith.mulf %9, %8 : vector<128x16xf32>
    %11 = math.tanh %10 : vector<128x16xf32>
    %cst_6 = arith.constant 1.000000e+00 : f32
    %12 = vector.broadcast %cst_6 : f32 to vector<128x16xf32>
    %13 = arith.addf %11, %12 : vector<128x16xf32>
    %cst_7 = arith.constant 5.000000e-01 : f32
    %14 = vector.broadcast %cst_7 : f32 to vector<128x16xf32>
    %15 = arith.mulf %14, %13 : vector<128x16xf32>
    %16 = arith.mulf %7, %15 : vector<128x16xf32>
    %c0_8 = arith.constant 0 : index
    %c0_9 = arith.constant 0 : index
    %17 = vector.load %arg4[%c0_8, %c0_9] : memref<1x16xf32, #tpu.memory_space<vmem>>, vector<1x16xf32>
    %cst_10 = arith.constant dense<0.000000e+00> : vector<1x128xf32>
    %18 = tpu.matmul %17, %16, %cst_10 {dimension_numbers = #tpu.dot_dimension_numbers<[1], [1], [0], [0], [0, 0, 1, 0], [], []>} : vector<1x16xf32>, vector<128x16xf32>, vector<1x128xf32> -> vector<1x128xf32>
    %c0_11 = arith.constant 0 : index
    %c0_12 = arith.constant 0 : index
    %19 = vector.load %arg5[%c0_11, %c0_12] : memref<1x1xf32, #tpu.memory_space<vmem>>, vector<1x1xf32>
    %20 = vector.broadcast %19 : vector<1x1xf32> to vector<1x128xf32>
    %21 = arith.addf %18, %20 : vector<1x128xf32>
    %c0_13 = arith.constant 0 : index
    %c0_14 = arith.constant 0 : index
    %22 = vector.load %arg6[%c0_13, %c0_14] : memref<1x128xf32, #tpu.memory_space<vmem>>, vector<1x128xf32>
    tpu.vector_store %arg6[%c0_13, %c0_14], %21 {strides = array<i32>} : memref<1x128xf32, #tpu.memory_space<vmem>>, vector<1x128xf32>,
    return
  }
  func.func @transform_0(%arg0: i32) -> (i32, i32) {
    %c0_i32 = arith.constant 0 : i32
    %c0_i32_0 = arith.constant 0 : i32
    return %arg0, %c0_i32 : i32, i32
  }
  func.func @transform_1(%arg0: i32) -> (i32, i32) {
    %c0_i32 = arith.constant 0 : i32
    %c0_i32_0 = arith.constant 0 : i32
    %c0_i32_1 = arith.constant 0 : i32
    return %c0_i32, %c0_i32_0 : i32, i32
  }
  func.func @transform_2(%arg0: i32) -> (i32, i32) {
    %c0_i32 = arith.constant 0 : i32
    %c0_i32_0 = arith.constant 0 : i32
    %c0_i32_1 = arith.constant 0 : i32
    return %c0_i32, %c0_i32_0 : i32, i32
  }
  func.func @transform_3(%arg0: i32) -> (i32, i32) {
    %c0_i32 = arith.constant 0 : i32
    %c0_i32_0 = arith.constant 0 : i32
    %c0_i32_1 = arith.constant 0 : i32
    return %c0_i32, %c0_i32_0 : i32, i32
  }
  func.func @transform_4(%arg0: i32) -> (i32, i32) {
    %c0_i32 = arith.constant 0 : i32
    %c0_i32_0 = arith.constant 0 : i32
    %c0_i32_1 = arith.constant 0 : i32
    return %c0_i32, %c0_i32_0 : i32, i32
  }
  func.func @transform_5(%arg0: i32) -> (i32, i32) {
    %c0_i32 = arith.constant 0 : i32
    %c0_i32_0 = arith.constant 0 : i32
    return %c0_i32, %arg0 : i32, i32
  }
}

</mosaic_0001>

<bundles_post_ra>
// kernel: tpu_custom_call.1
= control target key start
LH: loop header
LB: loop body
LE: loop exit
PB: predicated region body
PF: predicated region fallthrough
CT: control target
= control target key end

     0   :  { %s840_s0 = inlined_call_operand.hbm [shape: f32[8,32], index: 0, kind: input, shape index: {}]   ;;  %s841_s1 = inlined_call_operand.hbm [shape: f32[32,32], index: 1, kind: input, shape index: {}]   ;;  %s842_s2 = inlined_call_operand.vmem [shape: f32[1,32], index: 2, kind: input, shape index: {}]   ;;  %s843_s3 = inlined_call_operand.vmem [shape: f32[1,16], index: 3, kind: input, shape index: {}]   ;;  %s844_s4 = inlined_call_operand.<no memory space> [shape: f32[1,1], index: 4, kind: input, shape index: {}]   ;;  %s845_s5 = inlined_call_operand.hbm [shape: f32[1,128], index: 5, kind: output, shape index: {}]  }
   0x1   :  { %v10_v0 = vstv %s844_s4 }
   0x2   :  { %11 = vst [vmem:[#allocation2] sm:$0x1] %v10_v0 }
   0x3   :  { %12 = vsyncpa [#allocation4], 0 }
   0x4   :  { %13 = vsyncpa [#allocation7], 0 }
   0x5   :  { %14 = vsyncpa [#allocation5], 0 }
   0x6   :  { %18 = vsyncadd [#allocation4], 1920  ;;  %s19_s22 = sshll.u32 %s840_s0, 4  ;;  %s645_s23 = smov [#allocation3]   ;;  %s20_s22 = int_to_ptr.hbm [resolvable:$true] %s19_s22 }
   0x7   :  { %s21_s24 = sshll.u32 %s645_s23, 4  ;;  %s32_s27 = sshll.u32 %s841_s1, 4  ;;  %s22_s24 = int_to_ptr.vmem [resolvable:$true] %s21_s24  ;;  %s33_s27 = int_to_ptr.hbm [resolvable:$true] %s32_s27 }
   0x8   :  { %s646_s28 = smov 128   ;;  %s647_s29 = smov 8  }
   0x9   :  { %27 = dma.hbm_to_vmem [thread:$0]  %s20_s22, 128, %s22_s24, [#allocation4], %s646_s28, %s646_s28, %s647_s29  }
   0xa   :  { %s648_s4 = smov [#allocation6]  }
   0xb   :  { %s34_s30 = sshll.u32 %s648_s4, 4  ;;  %s35_s30 = int_to_ptr.vmem [resolvable:$true] %s34_s30 }
   0xc   :  { %40 = dma.hbm_to_vmem [thread:$0]  %s33_s27, 512, %s35_s30, [#allocation7], %s646_s28, %s646_s28, %s647_s29  }
   0xd   :  { %639 = dma.done.wait [#allocation4], 2048  }
   0xe   :  { %640 = vsyncadd [#allocation4], 4294965248 }
   0xf   :  { %641 = dma.done.wait [#allocation7], 512  }
  0x10   :  { %642 = vsyncadd [#allocation7], 4294966784  ;;  %v74_v1 = vld [vmem:[#allocation6 + $0x18] sm:$0xff]  ;;  %v73_v2 = vld [vmem:[#allocation6 + $0x10] sm:$0xff]  ;;  %vm79_vm0 = vcmask 261120   ;;  %vm361_vm1 = vcmask 130048  }
  0x11   :  { %140 = vmatpush.msra.mxu0 %v74_v1  ;;  %485 = vmatpush.msra.mxu2 %v74_v1  ;;  %v72_v3 = vld [vmem:[#allocation6 + $0x8] sm:$0xff]  ;;  %v71_v4 = vld [vmem:[#allocation6] sm:$0xff]  ;;  %v61_v6 = vld [vmem:[#allocation3 + $0x30] sm:$0xff]  ;;  %s651_s8 = smov [#allocation8]   ;;  %s441_s12 = sshll.u32 %s845_s5, 4  ;;  %s442_s12 = int_to_ptr.hbm [resolvable:$true] %s441_s12 }
  0x12   :  { %486 = vmatpush.msra.mxu3 %v74_v1  ;;  %v55_v5 = vld [vmem:[#allocation3] sm:$0xff]  ;;  %v56_v8 = vld [vmem:[#allocation3 + $0x8] sm:$0xff]  ;;  %v62_v9 = vld [vmem:[#allocation3 + $0x38] sm:$0xff]  ;;  %s439_s9 = sshll.u32 %s651_s8, 4  ;;  %s440_s9 = int_to_ptr.vmem [resolvable:$true] %s439_s9 }
  0x13   :  { %141 = vmatpush.msra.mxu0 %v73_v2  ;;  %487 = vmatpush.msra.mxu2 %v73_v2  ;;  %v67_v7 = vld [vmem:[#allocation3 + $0x60] sm:$0xff]  ;;  %v68_v10 = vld [vmem:[#allocation3 + $0x68] sm:$0xff]  ;;  %v57_v11 = vld [vmem:[#allocation3 + $0x10] sm:$0xff] }
  0x14   :  { %488 = vmatpush.msra.mxu3 %v73_v2  ;;  %v63_v12 = vld [vmem:[#allocation3 + $0x40] sm:$0xff]  ;;  %v69_v13 = vld [vmem:[#allocation3 + $0x70] sm:$0xff]  ;;  %v58_v14 = vld [vmem:[#allocation3 + $0x18] sm:$0xff] }
  0x15   :  { %142 = vmatpush.msra.mxu0 %v72_v3  ;;  %489 = vmatpush.msra.mxu2 %v72_v3  ;;  %v64_v15 = vld [vmem:[#allocation3 + $0x48] sm:$0xff]  ;;  %v70_v16 = vld [vmem:[#allocation3 + $0x78] sm:$0xff]  ;;  %v59_v17 = vld [vmem:[#allocation3 + $0x20] sm:$0xff] }
  0x16   :  { %490 = vmatpush.msra.mxu3 %v72_v3  ;;  %v65_v18 = vld [vmem:[#allocation3 + $0x50] sm:$0xff]  ;;  %v60_v19 = vld [vmem:[#allocation3 + $0x28] sm:$0xff]  ;;  %v66_v20 = vld [vmem:[#allocation3 + $0x58] sm:$0xff] }
  0x17   :  { %143 = vmatpush.msra.mxu0 %v71_v4  ;;  %491 = vmatpush.msra.mxu2 %v71_v4  ;;  %v712_v22 = vld [vmem:[%s842_s2] ss:$0 sm:$0xff]  ;;  %s649_s2 = smov 112  }
  0x18   :  { %492 = vmatpush.msra.mxu3 %v71_v4  ;;  %452 = vmatmul.msk.f32.vlgmr.msra.gmra.mxu0 %vm79_vm0, %v55_v5 }
  0x19   :  { %458 = vmatmul.msk.f32.vlgmr.msra.gmra.mxu2 %vm79_vm0, %v61_v6  ;;  %464 = vmatmul.msk.f32.vlgmr.msra.gmra.mxu3 %vm79_vm0, %v67_v7 }
  0x20   :  { %453 = vmatmul.msk.f32.gmra.mxu0 %vm79_vm0, %v56_v8 }
  0x21   :  { %459 = vmatmul.msk.f32.gmra.mxu2 %vm79_vm0, %v62_v9  ;;  %465 = vmatmul.msk.f32.gmra.mxu3 %vm79_vm0, %v68_v10 }
  0x28   :  { %454 = vmatmul.msk.f32.gmra.mxu0 %vm79_vm0, %v57_v11 }
  0x29   :  { %460 = vmatmul.msk.f32.gmra.mxu2 %vm79_vm0, %v63_v12  ;;  %466 = vmatmul.msk.f32.gmra.mxu3 %vm79_vm0, %v69_v13 }
  0x30   :  { %455 = vmatmul.msk.f32.gmra.mxu0 %vm79_vm0, %v58_v14 }
  0x31   :  { %461 = vmatmul.msk.f32.gmra.mxu2 %vm79_vm0, %v64_v15  ;;  %467 = vmatmul.msk.f32.gmra.mxu3 %vm79_vm0, %v70_v16 }
  0x38   :  { %456 = vmatmul.msk.f32.gmra.mxu0 %vm79_vm0, %v59_v17 }
  0x39   :  { %462 = vmatmul.msk.f32.gmra.mxu2 %vm79_vm0, %v65_v18 }
  0x40   :  { %457 = vmatmul.msk.f32.gmra.mxu0 %vm79_vm0, %v60_v19 }
  0x41   :  { %463 = vmatmul.msk.f32.gmra.mxu2 %vm79_vm0, %v66_v20 }
  0x95   :  { %v707_v21 = vpop.f32.mrf.mxu0 }
  0x9c   :  { %v163_v23 = vpop.f32.mrf.mxu2  ;;  %v181_v24 = vpop.f32.mrf.mxu3 }
  0x9d   :  { %v148_v25 = vpop.f32.mrf.mxu0  ;;  %v723_v31 = vadd.f32 %v712_v22, %v181_v24  ;;  %v760_v5 = vadd.f32 %v712_v22, %v163_v23 }
  0x9e   :  { %v715_v26 = vadd.f32 %v712_v22, %v148_v25 }
  0x9f   :  { %v221_v33 = vmul.f32 0.5, %v723_v31  ;;  %v215_v12 = vmul.f32 0.5, %v760_v5 }
  0xa4   :  { %v717_v27 = vpop.f32.mrf.mxu2  ;;  %v184_v28 = vpop.f32.mrf.mxu3 }
  0xa5   :  { %v720_v29 = vadd.f32 %v712_v22, %v184_v28  ;;  %v151_v30 = vpop.f32.mrf.mxu0  ;;  %v771_v17 = vadd.f32 %v712_v22, %v717_v27 }
  0xa6   :  { %v746_v54 = vadd.f32 %v712_v22, %v151_v30 }
  0xa7   :  { %v222_v32 = vmul.f32 0.5, %v720_v29  ;;  %v216_v24 = vmul.f32 0.5, %v771_v17 }
  0xa8   :  { %v211_v61 = vmul.f32 0.5, %v746_v54 }
  0xa9   :  { %503 = vtanh.f32 %v222_v32 }
  0xaa   :  { %505 = vtanh.f32 %v221_v33 }
  0xac   :  { %v169_v34 = vpop.f32.mrf.mxu2  ;;  %v187_v35 = vpop.f32.mrf.mxu3 }
  0xad   :  { %v728_v36 = vadd.f32 %v712_v22, %v169_v34  ;;  %v154_v37 = vpop.f32.mrf.mxu0  ;;  %v732_v45 = vadd.f32 %v712_v22, %v187_v35  ;;  %v782_v35 = vadd.f32 %v712_v22, %v707_v21 }
  0xae   :  { %v775_v19 = vadd.f32 %v712_v22, %v154_v37 }
  0xaf   :  { %v504_v38 = vpop.eup %503  ;;  %v217_v39 = vmul.f32 0.5, %v728_v36  ;;  %v223_v50 = vmul.f32 0.5, %v732_v45 }
  0xb0   :  { %v254_v40 = vadd.f32 1.0, %v504_v38  ;;  %v506_v42 = vpop.eup %505  ;;  %v212_v32 = vmul.f32 0.5, %v775_v19 }
  0xb1   :  { %507 = vtanh.f32 %v217_v39  ;;  %v253_v49 = vadd.f32 1.0, %v506_v42 }
  0xb2   :  { %v270_v41 = vmul.f32 0.5, %v254_v40  ;;  %v209_v40 = vmul.f32 0.5, %v782_v35 }
  0xb3   :  { %v269_v53 = vmul.f32 0.5, %v253_v49 }
  0xb4   :  { %v190_v43 = vpop.f32.mrf.mxu3  ;;  %v172_v44 = vpop.f32.mrf.mxu2  ;;  %315 = vrot.lane.b32.xlu1 %v270_v41, %s649_s2 }
  0xb5   :  { %v735_v46 = vadd.f32 %v712_v22, %v190_v43  ;;  %v738_v47 = vpop.f32.mrf.mxu0  ;;  %v743_v52 = vadd.f32 %v712_v22, %v172_v44 }
  0xb6   :  { %v788_v38 = vadd.f32 %v712_v22, %v738_v47  ;;  %v210_v47 = vmul.f32 0.5, %v715_v26 }
  0xb7   :  { %v224_v48 = vmul.f32 0.5, %v735_v46  ;;  %v508_v51 = vpop.eup %507  ;;  %v218_v60 = vmul.f32 0.5, %v743_v52 }
  0xb8   :  { %v249_v57 = vadd.f32 1.0, %v508_v51  ;;  %v213_v21 = vmul.f32 0.5, %v788_v38 }
  0xb9   :  { %509 = vtanh.f32 %v224_v48 }
  0xba   :  { %511 = vtanh.f32 %v223_v50  ;;  %v265_v0 = vmul.f32 0.5, %v249_v57 }
  0xbc   :  { %v175_v55 = vpop.f32.mrf.mxu2  ;;  %313 = vrot.lane.b32.xlu1 %v269_v53, %s649_s2 }
  0xbd   :  { %v160_v56 = vpop.f32.mrf.mxu0  ;;  %v756_v3 = vadd.f32 %v712_v22, %v175_v55 }
  0xbe   :  { %v750_v58 = vadd.f32 %v712_v22, %v160_v56 }
  0xbf   :  { %v510_v59 = vpop.eup %509  ;;  %v219_v8 = vmul.f32 0.5, %v756_v3 }
  0xc0   :  { %v214_v62 = vmul.f32 0.5, %v750_v58  ;;  %v256_v63 = vadd.f32 1.0, %v510_v59  ;;  %v512_v2 = vpop.eup %511 }
  0xc1   :  { %v255_v7 = vadd.f32 1.0, %v512_v2 }
  0xc2   :  { %513 = vtanh.f32 %v214_v62  ;;  %v272_v1 = vmul.f32 0.5, %v256_v63 }
  0xc3   :  { %515 = vtanh.f32 %v218_v60  ;;  %v271_v15 = vmul.f32 0.5, %v255_v7 }
  0xc4   :  { %517 = vtanh.f32 %v211_v61  ;;  %319 = vrot.lane.b32.xlu0 %v272_v1, %s649_s2  ;;  %v178_v4 = vpop.f32.mrf.mxu2  ;;  %305 = vrot.lane.b32.xlu1 %v265_v0, %s649_s2 }
  0xc5   :  { %v763_v6 = vadd.f32 %v712_v22, %v178_v4 }
  0xc7   :  { %v220_v9 = vmul.f32 0.5, %v763_v6 }
  0xc8   :  { %v514_v10 = vpop.eup %513 }
  0xc9   :  { %v516_v11 = vpop.eup %515  ;;  %519 = vtanh.f32 %v220_v9  ;;  %v246_v13 = vadd.f32 1.0, %v514_v10 }
  0xca   :  { %v518_v14 = vpop.eup %517  ;;  %521 = vtanh.f32 %v219_v8  ;;  %v250_v18 = vadd.f32 1.0, %v516_v11 }
  0xcb   :  { %v262_v16 = vmul.f32 0.5, %v246_v13  ;;  %523 = vtanh.f32 %v215_v12  ;;  %v243_v20 = vadd.f32 1.0, %v518_v14 }
  0xcc   :  { %317 = vrot.lane.b32.xlu0 %v271_v15, %s649_s2  ;;  %v266_v28 = vmul.f32 0.5, %v250_v18  ;;  %525 = vtanh.f32 %v216_v24 }
  0xcd   :  { %299 = vrot.lane.b32.xlu1 %v262_v16, %s649_s2  ;;  %v259_v27 = vmul.f32 0.5, %v243_v20  ;;  %527 = vtanh.f32 %v212_v32 }
  0xce   :  { %529 = vtanh.f32 %v209_v40 }
  0xcf   :  { %v520_v23 = vpop.eup %519  ;;  %531 = vtanh.f32 %v213_v21 }
  0xd0   :  { %v252_v25 = vadd.f32 1.0, %v520_v23  ;;  %v522_v30 = vpop.eup %521  ;;  %533 = vtanh.f32 %v210_v47 }
  0xd1   :  { %v524_v34 = vpop.eup %523  ;;  %v251_v37 = vadd.f32 1.0, %v522_v30  ;;  %535 = vtanh.f32 %v735_v46  ;;  %v650_v30 = vmov 0  }
  0xd2   :  { %v268_v33 = vmul.f32 0.5, %v252_v25  ;;  %v247_v39 = vadd.f32 1.0, %v524_v34  ;;  %v526_v42 = vpop.eup %525  ;;  %537 = vtanh.f32 %v732_v45  ;;  %500 = vset.pattern.permute.xlu1 %v650_v30  ;;  %501 = vset.pattern.permute.xlu0 %v650_v30 }
  0xd3   :  { %v267_v41 = vmul.f32 0.5, %v251_v37  ;;  %v528_v44 = vpop.eup %527  ;;  %v248_v48 = vadd.f32 1.0, %v526_v42  ;;  %539 = vtanh.f32 %v720_v29 }
  0xd4   :  { %311 = vrot.lane.b32.xlu2 %v268_v33, %s649_s2  ;;  %307 = vrot.lane.b32.xlu0 %v266_v28, %s649_s2  ;;  %v263_v43 = vmul.f32 0.5, %v247_v39  ;;  %v244_v22 = vadd.f32 1.0, %v528_v44  ;;  %v530_v49 = vpop.eup %529  ;;  %541 = vtanh.f32 %v723_v31  ;;  %v354_v28 = vld [vmem:[#allocation2] sm:$0x1] }
  0xd5   :  { %293 = vrot.lane.b32.xlu1 %v259_v27, %s649_s2  ;;  %v264_v50 = vmul.f32 0.5, %v248_v48  ;;  %v532_v53 = vpop.eup %531  ;;  %v241_v56 = vadd.f32 1.0, %v530_v49  ;;  %543 = vtanh.f32 %v763_v6 }
  0xd6   :  { %v260_v51 = vmul.f32 0.5, %v244_v22  ;;  %v245_v55 = vadd.f32 1.0, %v532_v53  ;;  %v534_v60 = vpop.eup %533  ;;  %545 = vtanh.f32 %v756_v3 }
  0xd7   :  { %v257_v59 = vmul.f32 0.5, %v241_v56  ;;  %v242_v61 = vadd.f32 1.0, %v534_v60  ;;  %v536_v63 = vpop.eup %535  ;;  %547 = vtanh.f32 %v743_v52 }
  0xd8   :  { %v261_v57 = vmul.f32 0.5, %v245_v55  ;;  %v538_v4 = vpop.eup %537  ;;  %549 = vtanh.f32 %v728_v36 }
  0xd9   :  { %v258_v62 = vmul.f32 0.5, %v242_v61  ;;  %v540_v9 = vpop.eup %539  ;;  %551 = vtanh.f32 %v771_v17 }
  0xda   :  { %v542_v45 = vpop.eup %541  ;;  %553 = vtanh.f32 %v760_v5 }
  0xdb   :  { %v544_v29 = vpop.eup %543  ;;  %555 = vtanh.f32 %v750_v58 }
  0xdc   :  { %309 = vrot.lane.b32.xlu2 %v267_v41, %s649_s2  ;;  %301 = vrot.lane.b32.xlu0 %v263_v43, %s649_s2  ;;  %v546_v14 = vpop.eup %545  ;;  %557 = vtanh.f32 %v788_v38 }
  0xdd   :  { %v548_v16 = vpop.eup %547  ;;  %357 = vperm.xlu1 %500, %v354_v28   ;;  %559 = vtanh.f32 %v775_v19 }
  0xde   :  { %v550_v20 = vpop.eup %549  ;;  %561 = vtanh.f32 %v746_v54 }
  0xdf   :  { %v552_v24 = vpop.eup %551  ;;  %563 = vtanh.f32 %v715_v26  ;;  %v353_v26 = vld [vmem:[%s843_s3] sm:$0x1] }
  0xe0   :  { %v554_v17 = vpop.eup %553  ;;  %565 = vtanh.f32 %v782_v35 }
  0xe1   :  { %v556_v27 = vpop.eup %555 }
  0xe2   :  { %v558_v34 = vpop.eup %557 }
  0xe3   :  { %v560_v40 = vpop.eup %559 }
  0xe4   :  { %303 = vrot.lane.b32.xlu2 %v264_v50, %s649_s2  ;;  %295 = vrot.lane.b32.xlu0 %v260_v51, %s649_s2  ;;  %v562_v21 = vpop.eup %561 }
  0xe5   :  { %v564_v43 = vpop.eup %563 }
  0xe6   :  { %v566_v48 = vpop.eup %565 }
  0xec   :  { %297 = vrot.lane.b32.xlu2 %v261_v57, %s649_s2  ;;  %289 = vrot.lane.b32.xlu0 %v257_v59, %s649_s2 }
  0xf4   :  { %291 = vrot.lane.b32.xlu2 %v258_v62, %s649_s2 }
 0x126   :  { %v316_v2 = vpop.permute.xlu1 %315 }
 0x127   :  { %v350_v10 = vmul.f32 %v540_v9, %v316_v2 }
 0x12e   :  { %v312_v46 = vpop.permute.xlu2 %311  ;;  %v314_v11 = vpop.permute.xlu1 %313 }
 0x12f   :  { %v349_v12 = vmul.f32 %v542_v45, %v314_v11  ;;  %v348_v13 = vmul.f32 %v544_v29, %v312_v46 }
 0x136   :  { %v320_v0 = vpop.permute.xlu0 %319  ;;  %v310_v31 = vpop.permute.xlu2 %309 }
 0x137   :  { %v352_v1 = vmul.f32 %v536_v63, %v320_v0  ;;  %v347_v15 = vmul.f32 %v546_v14, %v310_v31  ;;  %v306_v3 = vpop.permute.xlu1 %305 }
 0x138   :  { %v345_v23 = vmul.f32 %v550_v20, %v306_v3 }
 0x139   :  { %468 = vmatpush.xpose.msk.msra.mxu1 %vm361_vm1, %v352_v1 }
 0x13e   :  { %v318_v7 = vpop.permute.xlu0 %317  ;;  %v304_v52 = vpop.permute.xlu2 %303 }
 0x13f   :  { %v351_v8 = vmul.f32 %v538_v4, %v318_v7  ;;  %v344_v25 = vmul.f32 %v552_v24, %v304_v52  ;;  %v300_v5 = vpop.permute.xlu1 %299 }
 0x140   :  { %v342_v33 = vmul.f32 %v556_v27, %v300_v5 }
 0x141   :  { %469 = vmatpush.xpose.msk.msra.mxu1 %vm361_vm1, %v351_v8 }
 0x145   :  { %470 = vmatpush.xpose.msk.msra.mxu1 %vm361_vm1, %v350_v10 }
 0x146   :  { %v308_v6 = vpop.permute.xlu0 %307  ;;  %v298_v58 = vpop.permute.xlu2 %297 }
 0x147   :  { %v346_v18 = vmul.f32 %v548_v16, %v308_v6  ;;  %v341_v37 = vmul.f32 %v558_v34, %v298_v58  ;;  %v294_v38 = vpop.permute.xlu1 %293 }
 0x148   :  { %v339_v42 = vmul.f32 %v562_v21, %v294_v38 }
 0x149   :  { %471 = vmatpush.xpose.msk.msra.mxu1 %vm361_vm1, %v349_v12 }
 0x14d   :  { %472 = vmatpush.xpose.msk.msra.mxu1 %vm361_vm1, %v348_v13 }
 0x14e   :  { %v302_v36 = vpop.permute.xlu0 %301  ;;  %v292_v19 = vpop.permute.xlu2 %291 }
 0x14f   :  { %v343_v32 = vmul.f32 %v554_v17, %v302_v36  ;;  %v338_v44 = vmul.f32 %v564_v43, %v292_v19  ;;  %v358_v47 = vpop.permute.xlu1 %357 }
 0x150   :  { %v360_v35 = vperm.slane %v358_v47, 0 }
 0x151   :  { %473 = vmatpush.xpose.msk.msra.mxu1 %vm361_vm1, %v347_v15 }
 0x155   :  { %474 = vmatpush.xpose.msk.msra.mxu1 %vm361_vm1, %v346_v18 }
 0x156   :  { %v296_v39 = vpop.permute.xlu0 %295 }
 0x157   :  { %v340_v41 = vmul.f32 %v560_v40, %v296_v39 }
 0x159   :  { %475 = vmatpush.xpose.msk.msra.mxu1 %vm361_vm1, %v345_v23 }
 0x15d   :  { %476 = vmatpush.xpose.msk.msra.mxu1 %vm361_vm1, %v344_v25 }
 0x15e   :  { %v290_v54 = vpop.permute.xlu0 %289 }
 0x15f   :  { %v337_v22 = vmul.f32 %v566_v48, %v290_v54 }
 0x161   :  { %477 = vmatpush.xpose.msk.msra.mxu1 %vm361_vm1, %v343_v32 }
 0x165   :  { %478 = vmatpush.xpose.msk.msra.mxu1 %vm361_vm1, %v342_v33 }
 0x169   :  { %479 = vmatpush.xpose.msk.msra.mxu1 %vm361_vm1, %v341_v37 }
 0x16d   :  { %480 = vmatpush.xpose.msk.msra.mxu1 %vm361_vm1, %v340_v41 }
 0x171   :  { %481 = vmatpush.xpose.msk.msra.mxu1 %vm361_vm1, %v339_v42 }
 0x175   :  { %482 = vmatpush.xpose.msk.msra.mxu1 %vm361_vm1, %v338_v44 }
 0x179   :  { %483 = vmatpush.xpose.msk.msra.mxu1 %vm361_vm1, %v337_v22 }
 0x17c   :  { %484 = vmatmul.msk.f32.vlgmr.msra.gmra.mxu1 %vm361_vm1, %v353_v26 }
 0x1f9   :  { %v430_v49 = vpop.f32.mrf.mxu1 }
 0x1fa   :  { %v431_v50 = vadd.f32 %v430_v49, %v360_v35 }
 0x1fc   :  { %433 = vst [vmem:[#allocation8] sm:$0x1] %v431_v50 }
 0x1fd   :  { %444 = dma.vmem_to_hbm [thread:$0]  %s440_s9, 16, %s442_s12, [#allocation5]  }
 0x1fe   :  { %643 = dma.done.wait [#allocation5], 16  }
 0x1ff   :  { %644 = vsyncadd [#allocation5], 4294967280 }
 0x200   :  { %449 = vsyncpa [#allocation4], 1 }
 0x201   :  { %450 = vsyncpa [#allocation7], 1 }
 0x202   :  { %451 = vsyncpa [#allocation5], 1 }

</bundles_post_ra>
